<compile_context>
chip_gen: v7x
topology: tpu7x:2x2x1
jax: 0.10.0
libtpu: 0.0.40
codegen_flags: <defaults>
</compile_context>

<pallas_src>
import jax
import jax.numpy as jnp
from jax.experimental import pallas as pl
from jax.experimental.pallas import tpu as pltpu

MAX_BATCH_TILE = 1024   # rows per grid step; per-step VMEM footprint ~2-3 MiB
SMALL_BATCH = 256       # at or below this, a single full-extent block (grid of 1)


def _cdiv(a, b):
    return (a + b - 1) // b


def _round_up(n, m):
    return (n + m - 1) // m * m


def _choose_batch_tile(batch):
    """Rows per grid step.

    - tiny batches: one full-extent block (block dim == array dim is always legal)
    - moderate batches: split into 2 steps so both v7x TensorCores get work
      (v5e/v6e are single-TC; the extra step costs ~0.35 us, negligible)
    - large batches: MAX_BATCH_TILE (sublane-aligned); the tail is a partial
      edge block whose store Pallas masks to the valid rows.
    """
    if batch <= SMALL_BATCH:
        return batch
    if batch <= 2 * MAX_BATCH_TILE:
        return _round_up(_cdiv(batch, 2), 8)
    return MAX_BATCH_TILE


def _mlp_kernel(x_ref, w0_ref, b0_ref, w1_ref, b1_ref, w2_ref, b2_ref, o_ref):
    """Fused Linear -> ReLU -> Linear -> ReLU -> Linear on one batch tile."""
    x = x_ref[...]                                   # (TB, F) f32, F tiny (=4)
    w0 = w0_ref[...]                                 # (F, H0) f32

    # ---- Layer 0: K=F contraction as F broadcast-FMAs on the VPU (full f32).
    # A 128-deep zero-padded MXU contraction for K=4 would be wasted MXU work
    # and would force a bf16 cast of the input.
    h0 = b0_ref[...] + x[:, 0:1] * w0[0:1, :]        # (TB, H0)
    for k in range(1, w0.shape[0]):                  # static unroll over F-1 terms
        h0 = h0 + x[:, k:k + 1] * w0[k:k + 1, :]
    h0 = jnp.maximum(h0, 0.0)

    # ---- Layers 1-2: K=32 contractions on the MXU, f32 operands / f32 accum.
    h1 = jnp.dot(h0, w1_ref[...], preferred_element_type=jnp.float32) + b1_ref[...]
    h1 = jnp.maximum(h1, 0.0)
    out = jnp.dot(h1, w2_ref[...], preferred_element_type=jnp.float32) + b2_ref[...]
    o_ref[...] = out.astype(o_ref.dtype)


def prepare_params(params):
    """One-time prep: transpose PyTorch-style (out, in) weights to (in, out) and
    reshape biases to (1, out).  Everything stays f32 and UNPADDED -- the real
    feature dims (4/32/32/16) are tiny, so padding would only inflate traffic."""
    (w0, b0), (w1, b1), (w2, b2) = params["l0"], params["l1"], params["l2"]
    t = lambda w: jnp.asarray(w, jnp.float32).T
    r = lambda b: jnp.asarray(b, jnp.float32).reshape(1, -1)
    return dict(w0=t(w0), b0=r(b0), w1=t(w1), b1=r(b1), w2=t(w2), b2=r(b2))


@jax.jit
def four_layer_forward(x, prep):
    """x: (B, n_features) float32. prep: output of prepare_params()."""
    w0, b0 = prep["w0"], prep["b0"]
    w1, b1 = prep["w1"], prep["b1"]
    w2, b2 = prep["w2"], prep["b2"]
    B, F = x.shape
    assert F == w0.shape[0], "feature dim mismatch"
    H2 = w2.shape[1]

    TB = _choose_batch_tile(B)
    grid = (_cdiv(B, TB),)

    const = lambda a: pl.BlockSpec(a.shape, lambda i: (0, 0))

    return pl.pallas_call(
        _mlp_kernel,
        out_shape=jax.ShapeDtypeStruct((B, H2), jnp.float32),
        grid_spec=pl.GridSpec(
            grid=grid,
            in_specs=[
                pl.BlockSpec((TB, F), lambda i: (i, 0)),   # x: batch-tiled, real F
                const(w0), const(b0),                      # weights / biases stay
                const(w1), const(b1),                      #   VMEM-resident across
                const(w2), const(b2),                      #   all grid steps
            ],
            # Real H2 (=16) last dim: full-extent block -> masked vst, but ~8x
            # fewer HBM bytes than a 128-lane padded f32 store.
            out_specs=pl.BlockSpec((TB, H2), lambda i: (i, 0)),
        ),
        compiler_params=pltpu.CompilerParams(
            dimension_semantics=("parallel",),    # independent rows -> TC sharding on v7x
            vmem_limit_bytes=32 * 1024 * 1024,    # far above the ~2-3 MiB/step footprint;
        ),                                        # also safe on v7x's 64 MiB physical VMEM
    )(x, w0, b0, w1, b1, w2, b2)


def init_params(key, n_features, hidden_neurons):
    """Deterministic synthetic init (PyTorch Linear-style uniform fan-in)."""
    dims = [n_features] + list(hidden_neurons)
    params = {}
    for li, (fan_in, fan_out) in enumerate(zip(dims[:-1], dims[1:])):
        key, kw, kb = jax.random.split(key, 3)
        bound = 1.0 / jnp.sqrt(fan_in)
        # PyTorch stores weight as (out, in)
        w = jax.random.uniform(kw, (fan_out, fan_in), jnp.float32, -bound, bound)
        b = jax.random.uniform(kb, (fan_out,), jnp.float32, -bound, bound)
        params[f"l{li}"] = (w, b)
    return params


def reference_forward(x, params):
    """Plain-JAX f32 reference mirroring the PyTorch module."""
    (w0, b0), (w1, b1), (w2, b2) = params["l0"], params["l1"], params["l2"]
    h = jnp.maximum(x @ w0.T + b0, 0.0)
    h = jnp.maximum(h @ w1.T + b1, 0.0)
    return h @ w2.T + b2


if __name__ == "__main__":
    # Shapes consistent with the module: n_features=4, hidden_neurons=[32, 32, 16].
    n_features = 4
    hidden_neurons = [32, 32, 16]

    key = jax.random.PRNGKey(0)
    key, kp = jax.random.split(key)
    params = init_params(kp, n_features, hidden_neurons)
    prep = prepare_params(params)   # one-time: transpose weights, reshape biases

    # Two batch sizes: a tiny single-block case, and a 2-step case whose last
    # grid step is a partial (masked) tail block.
    for batch in (19, 300):
        key, kx = jax.random.split(key)
        x = jax.random.normal(kx, (batch, n_features), jnp.float32)

        out = jax.block_until_ready(four_layer_forward(x, prep))
        ref = reference_forward(x, params)

        assert out.shape == (batch, hidden_neurons[-1])
        # Layer 0 is exact f32; tolerance allows for the MXU's internal pass
        # decomposition of the f32 matmuls in layers 1-2.
        assert jnp.allclose(out, ref, atol=2e-2, rtol=2e-2), \
            f"mismatch vs reference at batch={batch}"

    # TODO(synk): classifier / half_forward_end are not part of forward() and
    # are not implemented here.

    print("KERNEL_OK")
</pallas_src>

<mosaic_0001>
module attributes {stable_mosaic.version = 11 : i64} {
  func.func @_mlp_kernel(%arg0: i32, %arg1: memref<19x4xf32, #tpu.memory_space<vmem>>, %arg2: memref<4x32xf32, #tpu.memory_space<vmem>>, %arg3: memref<1x32xf32, #tpu.memory_space<vmem>>, %arg4: memref<32x32xf32, #tpu.memory_space<vmem>>, %arg5: memref<1x32xf32, #tpu.memory_space<vmem>>, %arg6: memref<32x16xf32, #tpu.memory_space<vmem>>, %arg7: memref<1x16xf32, #tpu.memory_space<vmem>>, %arg8: memref<19x16xf32, #tpu.memory_space<vmem>>) attributes {dimension_semantics = [#tpu.dimension_semantics<parallel>], iteration_bounds = array<i64: 1>, scalar_prefetch = 0 : i64, scratch_operands = 0 : i64, tpu.core_type = #tpu.core_type<tc>, window_params = [{transform_indices = @transform_0, window_bounds = array<i64: 19, 4>}, {pipeline_mode = #tpu.pipeline_mode<synchronous>, transform_indices = @transform_1, window_bounds = array<i64: 4, 32>}, {pipeline_mode = #tpu.pipeline_mode<synchronous>, transform_indices = @transform_2, window_bounds = array<i64: 1, 32>}, {pipeline_mode = #tpu.pipeline_mode<synchronous>, transform_indices = @transform_3, window_bounds = array<i64: 32, 32>}, {pipeline_mode = #tpu.pipeline_mode<synchronous>, transform_indices = @transform_4, window_bounds = array<i64: 1, 32>}, {pipeline_mode = #tpu.pipeline_mode<synchronous>, transform_indices = @transform_5, window_bounds = array<i64: 32, 16>}, {pipeline_mode = #tpu.pipeline_mode<synchronous>, transform_indices = @transform_6, window_bounds = array<i64: 1, 16>}, {transform_indices = @transform_7, window_bounds = array<i64: 19, 16>}]} {
    %c0 = arith.constant 0 : index
    %c0_0 = arith.constant 0 : index
    %0 = vector.load %arg1[%c0, %c0_0] : memref<19x4xf32, #tpu.memory_space<vmem>>, vector<19x4xf32>
    %c0_1 = arith.constant 0 : index
    %c0_2 = arith.constant 0 : index
    %1 = vector.load %arg2[%c0_1, %c0_2] : memref<4x32xf32, #tpu.memory_space<vmem>>, vector<4x32xf32>
    %c0_3 = arith.constant 0 : index
    %c0_4 = arith.constant 0 : index
    %2 = vector.load %arg3[%c0_3, %c0_4] : memref<1x32xf32, #tpu.memory_space<vmem>>, vector<1x32xf32>
    %3 = vector.extract_strided_slice %0 {offsets = [0, 0], sizes = [19, 1], strides = [1, 1]} : vector<19x4xf32> to vector<19x1xf32>
    %4 = vector.extract_strided_slice %1 {offsets = [0, 0], sizes = [1, 32], strides = [1, 1]} : vector<4x32xf32> to vector<1x32xf32>
    %5 = vector.broadcast %3 : vector<19x1xf32> to vector<19x32xf32>
    %6 = vector.broadcast %4 : vector<1x32xf32> to vector<19x32xf32>
    %7 = arith.mulf %5, %6 : vector<19x32xf32>
    %8 = vector.broadcast %2 : vector<1x32xf32> to vector<19x32xf32>
    %9 = arith.addf %8, %7 : vector<19x32xf32>
    %10 = vector.extract_strided_slice %0 {offsets = [0, 1], sizes = [19, 1], strides = [1, 1]} : vector<19x4xf32> to vector<19x1xf32>
    %11 = vector.extract_strided_slice %1 {offsets = [1, 0], sizes = [1, 32], strides = [1, 1]} : vector<4x32xf32> to vector<1x32xf32>
    %12 = vector.broadcast %10 : vector<19x1xf32> to vector<19x32xf32>
    %13 = vector.broadcast %11 : vector<1x32xf32> to vector<19x32xf32>
    %14 = arith.mulf %12, %13 : vector<19x32xf32>
    %15 = arith.addf %9, %14 : vector<19x32xf32>
    %16 = vector.extract_strided_slice %0 {offsets = [0, 2], sizes = [19, 1], strides = [1, 1]} : vector<19x4xf32> to vector<19x1xf32>
    %17 = vector.extract_strided_slice %1 {offsets = [2, 0], sizes = [1, 32], strides = [1, 1]} : vector<4x32xf32> to vector<1x32xf32>
    %18 = vector.broadcast %16 : vector<19x1xf32> to vector<19x32xf32>
    %19 = vector.broadcast %17 : vector<1x32xf32> to vector<19x32xf32>
    %20 = arith.mulf %18, %19 : vector<19x32xf32>
    %21 = arith.addf %15, %20 : vector<19x32xf32>
    %22 = vector.extract_strided_slice %0 {offsets = [0, 3], sizes = [19, 1], strides = [1, 1]} : vector<19x4xf32> to vector<19x1xf32>
    %23 = vector.extract_strided_slice %1 {offsets = [3, 0], sizes = [1, 32], strides = [1, 1]} : vector<4x32xf32> to vector<1x32xf32>
    %24 = vector.broadcast %22 : vector<19x1xf32> to vector<19x32xf32>
    %25 = vector.broadcast %23 : vector<1x32xf32> to vector<19x32xf32>
    %26 = arith.mulf %24, %25 : vector<19x32xf32>
    %27 = arith.addf %21, %26 : vector<19x32xf32>
    %cst = arith.constant 0.000000e+00 : f32
    %28 = vector.broadcast %cst : f32 to vector<19x32xf32>
    %29 = arith.maximumf %27, %28 : vector<19x32xf32>
    %c0_5 = arith.constant 0 : index
    %c0_6 = arith.constant 0 : index
    %30 = vector.load %arg4[%c0_5, %c0_6] : memref<32x32xf32, #tpu.memory_space<vmem>>, vector<32x32xf32>
    %cst_7 = arith.constant dense<0.000000e+00> : vector<19x32xf32>
    %31 = tpu.matmul %29, %30, %cst_7 {dimension_numbers = #tpu.dot_dimension_numbers<[1], [0], [0], [1], [0, 0, 1, 1], [], []>} : vector<19x32xf32>, vector<32x32xf32>, vector<19x32xf32> -> vector<19x32xf32>
    %c0_8 = arith.constant 0 : index
    %c0_9 = arith.constant 0 : index
    %32 = vector.load %arg5[%c0_8, %c0_9] : memref<1x32xf32, #tpu.memory_space<vmem>>, vector<1x32xf32>
    %33 = vector.broadcast %32 : vector<1x32xf32> to vector<19x32xf32>
    %34 = arith.addf %31, %33 : vector<19x32xf32>
    %cst_10 = arith.constant 0.000000e+00 : f32
    %35 = vector.broadcast %cst_10 : f32 to vector<19x32xf32>
    %36 = arith.maximumf %34, %35 : vector<19x32xf32>
    %c0_11 = arith.constant 0 : index
    %c0_12 = arith.constant 0 : index
    %37 = vector.load %arg6[%c0_11, %c0_12] : memref<32x16xf32, #tpu.memory_space<vmem>>, vector<32x16xf32>
    %cst_13 = arith.constant dense<0.000000e+00> : vector<19x16xf32>
    %38 = tpu.matmul %36, %37, %cst_13 {dimension_numbers = #tpu.dot_dimension_numbers<[1], [0], [0], [1], [0, 0, 1, 1], [], []>} : vector<19x32xf32>, vector<32x16xf32>, vector<19x16xf32> -> vector<19x16xf32>
    %c0_14 = arith.constant 0 : index
    %c0_15 = arith.constant 0 : index
    %39 = vector.load %arg7[%c0_14, %c0_15] : memref<1x16xf32, #tpu.memory_space<vmem>>, vector<1x16xf32>
    %40 = vector.broadcast %39 : vector<1x16xf32> to vector<19x16xf32>
    %41 = arith.addf %38, %40 : vector<19x16xf32>
    %c0_16 = arith.constant 0 : index
    %c0_17 = arith.constant 0 : index
    %42 = vector.load %arg8[%c0_16, %c0_17] : memref<19x16xf32, #tpu.memory_space<vmem>>, vector<19x16xf32>
    tpu.vector_store %arg8[%c0_16, %c0_17], %41 {strides = array<i32>} : memref<19x16xf32, #tpu.memory_space<vmem>>, vector<19x16xf32>,
    return
  }
  func.func @transform_0(%arg0: i32) -> (i32, i32) {
    %c0_i32 = arith.constant 0 : i32
    %c0_i32_0 = arith.constant 0 : i32
    return %arg0, %c0_i32 : i32, i32
  }
  func.func @transform_1(%arg0: i32) -> (i32, i32) {
    %c0_i32 = arith.constant 0 : i32
    %c0_i32_0 = arith.constant 0 : i32
    %c0_i32_1 = arith.constant 0 : i32
    return %c0_i32, %c0_i32_0 : i32, i32
  }
  func.func @transform_2(%arg0: i32) -> (i32, i32) {
    %c0_i32 = arith.constant 0 : i32
    %c0_i32_0 = arith.constant 0 : i32
    %c0_i32_1 = arith.constant 0 : i32
    return %c0_i32, %c0_i32_0 : i32, i32
  }
  func.func @transform_3(%arg0: i32) -> (i32, i32) {
    %c0_i32 = arith.constant 0 : i32
    %c0_i32_0 = arith.constant 0 : i32
    %c0_i32_1 = arith.constant 0 : i32
    return %c0_i32, %c0_i32_0 : i32, i32
  }
  func.func @transform_4(%arg0: i32) -> (i32, i32) {
    %c0_i32 = arith.constant 0 : i32
    %c0_i32_0 = arith.constant 0 : i32
    %c0_i32_1 = arith.constant 0 : i32
    return %c0_i32, %c0_i32_0 : i32, i32
  }
  func.func @transform_5(%arg0: i32) -> (i32, i32) {
    %c0_i32 = arith.constant 0 : i32
    %c0_i32_0 = arith.constant 0 : i32
    %c0_i32_1 = arith.constant 0 : i32
    return %c0_i32, %c0_i32_0 : i32, i32
  }
  func.func @transform_6(%arg0: i32) -> (i32, i32) {
    %c0_i32 = arith.constant 0 : i32
    %c0_i32_0 = arith.constant 0 : i32
    %c0_i32_1 = arith.constant 0 : i32
    return %c0_i32, %c0_i32_0 : i32, i32
  }
  func.func @transform_7(%arg0: i32) -> (i32, i32) {
    %c0_i32 = arith.constant 0 : i32
    %c0_i32_0 = arith.constant 0 : i32
    return %arg0, %c0_i32 : i32, i32
  }
}

</mosaic_0001>

<bundles_post_ra>
// kernel: four_layer_forward.1
= control target key start
LH: loop header
LB: loop body
LE: loop exit
PB: predicated region body
PF: predicated region fallthrough
CT: control target
= control target key end

     0   :  { %v431_v0 = vmov 0   ;;  %v432_v3 = vmov 2   ;;  %v433_v4 = vmov 3   ;;  %v434_v5 = vmov 1   ;;  %s550_s0 = inlined_call_operand.vmem [shape: f32[19,4], index: 0, kind: input, shape index: {}]   ;;  %s551_s3 = inlined_call_operand.vmem [shape: f32[32,32], index: 3, kind: input, shape index: {}]   ;;  %s552_s5 = inlined_call_operand.vmem [shape: f32[32,16], index: 5, kind: input, shape index: {}]   ;;  %s553_s1 = inlined_call_operand.vmem [shape: f32[4,32], index: 1, kind: input, shape index: {}]   ;;  %s554_s2 = inlined_call_operand.vmem [shape: f32[1,32], index: 2, kind: input, shape index: {}]   ;;  %s555_s4 = inlined_call_operand.vmem [shape: f32[1,32], index: 4, kind: input, shape index: {}]   ;;  %s556_s6 = inlined_call_operand.vmem [shape: f32[1,16], index: 6, kind: input, shape index: {}]   ;;  %s557_s7 = inlined_call_operand.vmem [shape: f32[19,16], index: 7, kind: output, shape index: {}]  }
   0x1   :  { %421 = vset.pattern.permute.xlu1 %v431_v0  ;;  %420 = vset.pattern.permute.xlu0 %v431_v0  ;;  %v27_v1 = vld [vmem:[%s550_s0 + $0x8] sm:$0xff]  ;;  %v26_v2 = vld [vmem:[%s550_s0] sm:$0xff]  ;;  %v28_v9 = vld [vmem:[%s550_s0 + $0x10] sm:$0x7]  ;;  %v435_v10 = vmov 0.0|0.0   ;;  %vm436_vm0 = vmmov 0   ;;  %v46_v18 = vlaneseq }
   0x2   :  { %38 = vperm.xlu1 %421, %v27_v1   ;;  %33 = vperm.xlu0 %420, %v26_v2   ;;  %v131_v6 = vld [vmem:[%s551_s3] sm:$0xff]  ;;  %v132_v7 = vld [vmem:[%s551_s3 + $0x8] sm:$0xff]  ;;  %v133_v11 = vld [vmem:[%s551_s3 + $0x10] sm:$0xff]  ;;  %v437_v14 = vmov 0.0   ;;  %vm142_vm1 = vcmask 261120   ;;  %vm335_vm2 = vcmask 130048  }
   0x3   :  { %v402_v8 = vpack.c.bf16 %v132_v7, %v131_v6  ;;  %401 = vmatprep.subr.bf16.mxu0 %v435_v10  ;;  %407 = vmatprep.subr.bf16.mxu1 %v435_v10  ;;  %v134_v12 = vld [vmem:[%s551_s3 + $0x18] sm:$0xff]  ;;  %v235_v15 = vld [vmem:[%s552_s5] sm:$0xff]  ;;  %v236_v16 = vld [vmem:[%s552_s5 + $0x8] sm:$0xff]  ;;  %v47_v19 = vshrl.u32 %v46_v18, 7  ;;  %vm338_vm3 = vcmask 124928  }
   0x4   :  { %v405_v13 = vpack.c.bf16 %v134_v12, %v133_v11  ;;  %375 = vmatprep.mubr.msk.f32.mxu0 %vm436_vm0, %v437_v14  ;;  %392 = vmatprep.mubr.msk.f32.mxu1 %vm436_vm0, %v437_v14  ;;  %v408_v17 = vpack.c.bf16 %v236_v16, %v235_v15  ;;  %v29_v21 = vld [vmem:[%s553_s1] sm:$0xf]  ;;  %v238_v6 = vld [vmem:[%s552_s5 + $0x18] sm:$0xff] }
   0x5   :  { %403 = vmatpush3.bf16.msra.mxu0 %v402_v8  ;;  %v48_v20 = vsub.s32 0, %v47_v19  ;;  %v76_v25 = vsub.s32 1, %v47_v19  ;;  %v98_v27 = vsub.s32 2, %v47_v19  ;;  %v120_v29 = vsub.s32 3, %v47_v19  ;;  %v344_v32 = vld [vmem:[%s554_s2] ss:$0 sm:$0xff] }
   0x6   :  { %422 = vset.pattern.permute.xlu1 %v432_v3  ;;  %424 = vset.pattern.permute.xlu0 %v433_v4  ;;  %v345_v8 = vld [vmem:[%s555_s4] ss:$0 sm:$0xff] }
   0x7   :  { %85 = vperm.xlu1 %422, %v26_v2   ;;  %107 = vperm.xlu0 %424, %v26_v2   ;;  %v49_v24 = vrot.slane %v29_v21, %v48_v20  ;;  %v77_v31 = vrot.slane %v29_v21, %v76_v25  ;;  %v99_v34 = vrot.slane %v29_v21, %v98_v27 }
   0x8   :  { %404 = vmatprep.subr.bf16.mxu0 %v435_v10  ;;  %409 = vmatpush3.bf16.msra.mxu1 %v408_v17  ;;  %v121_v35 = vrot.slane %v29_v21, %v120_v29 }
   0x9   :  { %406 = vmatpush3.bf16.msra.mxu0 %v405_v13  ;;  %410 = vmatprep.subr.bf16.mxu1 %v435_v10 }
   0xb   :  { %423 = vset.pattern.permute.xlu1 %v434_v5  ;;  %425 = vset.pattern.permute.xlu0 %v434_v5  ;;  %v237_v5 = vld [vmem:[%s552_s5 + $0x10] sm:$0xff] }
   0xc   :  { %67 = vperm.xlu1 %423, %v27_v1   ;;  %63 = vperm.xlu0 %425, %v26_v2   ;;  %v411_v7 = vpack.c.bf16 %v238_v6, %v237_v5 }
   0xe   :  { %412 = vmatpush3.bf16.msra.mxu1 %v411_v7 }
  0x10   :  { %426 = vset.pattern.permute.xlu1 %v431_v0  ;;  %71 = vperm.xlu0 %425, %v28_v9  }
  0x11   :  { %43 = vperm.xlu1 %426, %v28_v9  }
  0x14   :  { %430 = vset.pattern.permute.xlu0 %v433_v4 }
  0x15   :  { %427 = vset.pattern.permute.xlu1 %v432_v3  ;;  %115 = vperm.xlu0 %430, %v28_v9  }
  0x16   :  { %89 = vperm.xlu1 %427, %v27_v1  }
  0x1a   :  { %428 = vset.pattern.permute.xlu1 %v433_v4 }
  0x1b   :  { %111 = vperm.xlu1 %428, %v27_v1  }
  0x1f   :  { %429 = vset.pattern.permute.xlu1 %v432_v3 }
  0x20   :  { %93 = vperm.xlu1 %429, %v28_v9  }
  0x81   :  { %v39_v22 = vpop.permute.xlu1 %38  ;;  %v34_v23 = vpop.permute.xlu0 %33 }
  0x82   :  { %v50_v26 = vmul.f32 %v49_v24, %v34_v23  ;;  %v51_v45 = vmul.f32 %v49_v24, %v39_v22  ;;  %v349_v22 = vld [vmem:[%s556_s6] ss:$0 sm:$0xff] }
  0x84   :  { %v59_v33 = vadd.f32 %v344_v32, %v50_v26  ;;  %v60_v49 = vadd.f32 %v344_v32, %v51_v45 }
  0x86   :  { %v86_v28 = vpop.permute.xlu1 %85  ;;  %v108_v30 = vpop.permute.xlu0 %107 }
  0x87   :  { %v100_v39 = vmul.f32 %v99_v34, %v86_v28  ;;  %v122_v40 = vmul.f32 %v121_v35, %v108_v30 }
  0x8b   :  { %v68_v36 = vpop.permute.xlu1 %67  ;;  %v64_v37 = vpop.permute.xlu0 %63 }
  0x8c   :  { %v78_v38 = vmul.f32 %v77_v31, %v64_v37  ;;  %v79_v47 = vmul.f32 %v77_v31, %v68_v36 }
  0x8e   :  { %v81_v41 = vadd.f32 %v78_v38, %v59_v33  ;;  %v82_v52 = vadd.f32 %v79_v47, %v60_v49 }
  0x8f   :  { %v72_v53 = vpop.permute.xlu0 %71 }
  0x90   :  { %v103_v42 = vadd.f32 %v100_v39, %v81_v41  ;;  %v44_v43 = vpop.permute.xlu1 %43  ;;  %v80_v58 = vmul.f32 %v77_v31, %v72_v53 }
  0x91   :  { %v52_v51 = vmul.f32 %v49_v24, %v44_v43 }
  0x92   :  { %v125_v44 = vadd.f32 %v122_v40, %v103_v42 }
  0x93   :  { %v61_v57 = vadd.f32 %v344_v32, %v52_v51 }
  0x94   :  { %v128_v46 = vmax.f32 %v125_v44, 0.0  ;;  %v116_v60 = vpop.permute.xlu0 %115 }
  0x95   :  { %v90_v48 = vpop.permute.xlu1 %89  ;;  %v83_v63 = vadd.f32 %v80_v58, %v61_v57  ;;  %v124_v1 = vmul.f32 %v121_v35, %v116_v60 }
  0x96   :  { %376 = vmatmul.mubr.msk.f32.vlgmr.msra.gmra.mrb[0].mxu0 %vm142_vm1, %v128_v46  ;;  %v101_v50 = vmul.f32 %v99_v34, %v90_v48 }
  0x97   :  { %378 = vmatprep.mubr.msk.f32.mxu0 %vm436_vm0, %v437_v14 }
  0x98   :  { %v104_v55 = vadd.f32 %v101_v50, %v82_v52 }
  0x9a   :  { %v112_v54 = vpop.permute.xlu1 %111 }
  0x9b   :  { %v123_v56 = vmul.f32 %v121_v35, %v112_v54 }
  0x9d   :  { %v126_v59 = vadd.f32 %v123_v56, %v104_v55 }
  0x9f   :  { %v129_v61 = vmax.f32 %v126_v59, 0.0  ;;  %v94_v62 = vpop.permute.xlu1 %93 }
  0xa0   :  { %v102_v0 = vmul.f32 %v99_v34, %v94_v62 }
  0xa1   :  { %379 = vmatmul.mubr.msk.f32.gmra.mrb[2].mxu0 %vm142_vm1, %v129_v61 }
  0xa2   :  { %v105_v2 = vadd.f32 %v102_v0, %v83_v63  ;;  %381 = vmatprep.mubr.msk.f32.mxu0 %vm436_vm0, %v437_v14 }
  0xa4   :  { %v127_v3 = vadd.f32 %v124_v1, %v105_v2 }
  0xa6   :  { %v130_v4 = vmax.f32 %v127_v3, 0.0 }
  0xa8   :  { %382 = vmatmul.mubr.msk.f32.gmra.mrb[4].mxu0 %vm142_vm1, %v130_v4 }
 0x169   :  { %v218_v9 = vpop.f32.mrb[0].mxu0 }
 0x16a   :  { %v219_v10 = vadd.f32 %v345_v8, %v218_v9  ;;  %v377_v11 = vpop.f32.mrb[1].mxu0 }
 0x16c   :  { %v232_v12 = vmax.f32 %v219_v10, 0.0 }
 0x16e   :  { %393 = vmatmul.mubr.msk.f32.vlgmr.msra.gmra.mrb[0].mxu1 %vm142_vm1, %v232_v12 }
 0x16f   :  { %395 = vmatprep.mubr.msk.f32.mxu1 %vm436_vm0, %v437_v14 }
 0x174   :  { %v223_v13 = vpop.f32.mrb[2].mxu0 }
 0x175   :  { %v224_v15 = vadd.f32 %v345_v8, %v223_v13  ;;  %v380_v16 = vpop.f32.mrb[3].mxu0 }
 0x177   :  { %v233_v17 = vmax.f32 %v224_v15, 0.0 }
 0x179   :  { %396 = vmatmul.mubr.msk.f32.gmra.mrb[2].mxu1 %vm142_vm1, %v233_v17 }
 0x17a   :  { %398 = vmatprep.mubr.msk.f32.mxu1 %vm436_vm0, %v437_v14 }
 0x17b   :  { %v228_v18 = vpop.f32.mrb[4].mxu0 }
 0x17c   :  { %v229_v19 = vadd.f32 %v345_v8, %v228_v18  ;;  %v383_v20 = vpop.f32.mrb[5].mxu0 }
 0x17e   :  { %v234_v21 = vmax.f32 %v229_v19, 0.0 }
 0x180   :  { %399 = vmatmul.mubr.msk.f32.gmra.mrb[4].mxu1 %vm142_vm1, %v234_v21 }
 0x241   :  { %v321_v23 = vpop.f32.mrb[0].mxu1 }
 0x242   :  { %v322_v24 = vadd.f32 %v349_v22, %v321_v23  ;;  %v394_v25 = vpop.f32.mrb[1].mxu1 }
 0x244   :  { %336 = vst.msk [vmem:[%s557_s7] sm:$0xff] %vm335_vm2, %v322_v24 }
 0x24c   :  { %v326_v26 = vpop.f32.mrb[2].mxu1 }
 0x24d   :  { %v327_v14 = vadd.f32 %v349_v22, %v326_v26  ;;  %v397_v27 = vpop.f32.mrb[3].mxu1 }
 0x24f   :  { %337 = vst.msk [vmem:[%s557_s7 + $0x8] sm:$0xff] %vm335_vm2, %v327_v14 }
 0x253   :  { %v331_v28 = vpop.f32.mrb[4].mxu1 }
 0x254   :  { %v332_v29 = vadd.f32 %v349_v22, %v331_v28  ;;  %v400_v30 = vpop.f32.mrb[5].mxu1 }
 0x256   :  { %339 = vst.msk [vmem:[%s557_s7 + $0x10] sm:$0x7] %vm338_vm3, %v332_v29 }

</bundles_post_ra>
